<compile_context>
chip_gen: v5e
topology: v5e:2x2
jax: 0.10.0
libtpu: 0.0.40
codegen_flags: <defaults>
</compile_context>

<pallas_src>
import functools

import jax
import jax.numpy as jnp
import numpy as np
from jax.experimental import pallas as pl
from jax.experimental.pallas import tpu as pltpu

NBITS = 10                       # bits per axis; 3*10 = 30 bits fits int32
NAXES = 3
LANE = 128                       # TPU lane width; points laid out lane-dense
MAXQ = float((1 << NBITS) - 1)


def _part1by2(v):
    """Spread the low NBITS(=10) bits of int32 v so bit j lands at bit 3*j.
    Morton magic-mask spreading (all masks < 2^31, so plain int32 math)."""
    v = v & 0x3FF
    v = (v | (v << 16)) & 0x030000FF
    v = (v | (v << 8)) & 0x0300F00F
    v = (v | (v << 4)) & 0x030C30C3
    v = (v | (v << 2)) & 0x09249249
    return v


def _skilling_hilbert_index(X):
    """Skilling AxesToTranspose + Morton interleave, fully vectorised jnp.

    X: list of NAXES int32 arrays (identical shape) holding NBITS-bit quantised
    coordinates. Returns the int32 Hilbert index. Pure jnp, so the same integer
    math runs inside the Pallas kernel and in the XLA reference."""
    X = list(X)
    M = 1 << (NBITS - 1)

    # Inverse undo.
    Q = M
    while Q > 1:
        Pm = Q - 1
        for i in range(NAXES):
            cond = (X[i] & Q) != 0
            if i == 0:
                X[0] = jnp.where(cond, X[0] ^ Pm, X[0])
            else:
                t = (X[0] ^ X[i]) & Pm
                x0_new = jnp.where(cond, X[0] ^ Pm, X[0] ^ t)
                xi_new = jnp.where(cond, X[i], X[i] ^ t)
                X[0], X[i] = x0_new, xi_new
        Q >>= 1

    # Gray decode.
    for i in range(1, NAXES):
        X[i] = X[i] ^ X[i - 1]
    t = jnp.zeros_like(X[0])
    Q = M
    while Q > 1:
        cond = (X[NAXES - 1] & Q) != 0
        t = jnp.where(cond, t ^ (Q - 1), t)
        Q >>= 1
    X = [xi ^ t for xi in X]

    # Interleave: bit j of X[i] -> bit 3*j + (2 - i)  (X[0] supplies the MSB of
    # each 3-bit group), via three part1by2 spreads instead of a 30-step loop.
    return (_part1by2(X[0]) << 2) | (_part1by2(X[1]) << 1) | _part1by2(X[2])


def _hilbert_code_kernel(xt_ref, code_ref):
    """Fused per-cloud quantisation + Hilbert code.

    xt_ref  : (Bb, 3, S, LANE) f32  — coordinate-major, points dense on lanes/sublanes
    code_ref: (Bb, S, LANE)   int32 — Hilbert index per point (full-lane stores)
    """
    xt = xt_ref[...]
    x0, x1, x2 = xt[:, 0], xt[:, 1], xt[:, 2]            # full (Bb, S, LANE) planes

    # Per-cloud joint min/max over all points & coords (aspect-preserving
    # normalisation). Cross-lane reductions ride the XLU slot, which is idle
    # while the integer bit-twiddling below saturates the VALU slot.
    mn = jnp.minimum(jnp.minimum(x0, x1), x2)
    mx = jnp.maximum(jnp.maximum(x0, x1), x2)
    lo = jnp.min(jnp.min(mn, axis=2, keepdims=True), axis=1, keepdims=True)
    hi = jnp.max(jnp.max(mx, axis=2, keepdims=True), axis=1, keepdims=True)
    scale = MAXQ / jnp.maximum(hi - lo, 1e-12)

    # TODO(synk): the repo's exact HilbertCode quantisation (bit width /
    # normalisation) is not in the spec; NBITS=10 + per-cloud joint min/max is a
    # standard choice with the same sort-along-a-Hilbert-curve semantics.
    X = []
    for xi in (x0, x1, x2):
        qf = jnp.clip((xi - lo) * scale, 0.0, MAXQ)
        X.append(qf.astype(jnp.int32))                   # (Bb, S, LANE) int32

    code_ref[...] = _skilling_hilbert_index(X)


def _clouds_per_block(batch, n_pad):
    """Clouds per grid step: big enough to amortise the ~0.35 us/step overhead
    on the serial v5e/v6e grid, but keeping >=2 'parallel' steps when batch >= 2
    so both v7x TensorCores get work; per-step VMEM stays tiny (<= ~1 MiB)."""
    per_cloud_bytes = n_pad * 4 * (NAXES + 1)            # f32 input + int32 output
    bb = max(1, min(batch, (1 << 20) // max(per_cloud_bytes, 1)))
    if batch >= 2:
        bb = min(bb, batch // 2)
    while batch % bb:                                    # block count must divide batch
        bb -= 1
    return bb


@jax.jit
def _hilbert_codes(x):
    """Per-point 3-D Hilbert code via the fused Pallas kernel.
    x: (B, N, 3) -> (B, N) int32."""
    B, N, _ = x.shape
    n_pad = ((N + LANE - 1) // LANE) * LANE
    S = n_pad // LANE

    xt = jnp.transpose(x.astype(jnp.float32), (0, 2, 1))          # (B, 3, N)
    if n_pad != N:
        # Edge-pad with existing points so in-kernel min/max is unchanged;
        # codes of padded points are sliced off below.
        xt = jnp.pad(xt, ((0, 0), (0, 0), (0, n_pad - N)), mode="edge")
    xt4 = xt.reshape(B, NAXES, S, LANE)                            # lane-dense points

    Bb = _clouds_per_block(B, n_pad)
    codes = pl.pallas_call(
        _hilbert_code_kernel,
        out_shape=jax.ShapeDtypeStruct((B, S, LANE), jnp.int32),
        grid_spec=pltpu.PrefetchScalarGridSpec(
            num_scalar_prefetch=0,
            grid=(B // Bb,),
            in_specs=[pl.BlockSpec((Bb, NAXES, S, LANE), lambda b: (b, 0, 0, 0))],
            out_specs=pl.BlockSpec((Bb, S, LANE), lambda b: (b, 0, 0)),
        ),
        compiler_params=pltpu.CompilerParams(
            dimension_semantics=("parallel",)),
    )(xt4)
    return codes.reshape(B, n_pad)[:, :N]


@functools.partial(jax.jit, static_argnames=("patch_size", "recenter"))
def group_hilbert_v2_forward(x, patch_size: int, recenter: bool = False):
    """Pallas/JAX equivalent of GroupHilbertV2.forward (sort=True, aux=None)."""
    B, N, C = x.shape
    assert C == 3 and N % patch_size == 0
    G = N // patch_size

    # --- 1) Hilbert code per point (fused quantise + code Pallas kernel) -----
    codes = _hilbert_codes(x)                                      # (B, N) int32

    # --- 2) SpatialSort: payload-carrying stable sort along the curve --------
    # TODO(synk): a per-cloud sort has no clean TPU-Pallas equivalent (no
    # on-core sort primitive); done with one multi-operand XLA lax.sort.
    xt = jnp.transpose(x, (0, 2, 1))                               # (B, 3, N)
    _, s0, s1, s2 = jax.lax.sort(
        (codes, xt[:, 0], xt[:, 1], xt[:, 2]),
        dimension=-1, is_stable=True, num_keys=1)

    # --- 3) Grouping: p is a pure reshape of the sorted points ---------------
    xs = jnp.stack([s0, s1, s2], axis=-1)                          # (B, N, 3)
    p = xs.reshape(B, G, patch_size, C)

    # --- 4) Patch centroids: trivial mean fused by XLA (no Pallas kernel, no
    #        bracketing transposes), f32 accumulation even for bf16 inputs. ----
    c = jnp.mean(p.astype(jnp.float32), axis=-2).astype(x.dtype)
    # recenter=True would set c = p.mean(-2); with sub=False that is the same
    # quantity, so no extra work is needed.
    return p, c


# ----------------------------- XLA reference --------------------------------
def _quantize_per_cloud_ref(x):
    lo = jnp.min(x, axis=(-2, -1), keepdims=True)
    hi = jnp.max(x, axis=(-2, -1), keepdims=True)
    scale = MAXQ / jnp.maximum(hi - lo, 1e-12)
    qf = jnp.clip((x - lo) * scale, 0.0, MAXQ)
    return qf.astype(jnp.int32)


def _hilbert_codes_ref(x):
    q = _quantize_per_cloud_ref(x)                                 # (B, N, 3)
    return _skilling_hilbert_index([q[..., i] for i in range(NAXES)])


if __name__ == "__main__":
    key = jax.random.PRNGKey(0)
    B, N, P = 2, 512, 32            # 2 clouds of 512 points, patch_size = 32
    x = jax.random.normal(key, (B, N, 3), dtype=jnp.float32)
    G = N // P

    p, c = group_hilbert_v2_forward(x, patch_size=P)
    jax.block_until_ready((p, c))
    assert p.shape == (B, G, P, 3) and c.shape == (B, G, 3)

    p_np, c_np, x_np = np.asarray(p), np.asarray(c), np.asarray(x)

    # (a) Centres are exactly the per-patch means.
    np.testing.assert_allclose(c_np, p_np.mean(axis=-2), rtol=1e-5, atol=1e-6)

    # (b) Each cloud's patches are exactly a permutation of its input points.
    for b in range(B):
        got = p_np[b].reshape(N, 3)
        exp = x_np[b]
        np.testing.assert_array_equal(got[np.lexsort(got.T)], exp[np.lexsort(exp.T)])

    # (c) p matches an independent argsort+gather built from the SAME kernel
    #     codes (validates the payload-carrying lax.sort + reshape path exactly).
    codes = np.asarray(_hilbert_codes(x))
    order = np.argsort(codes, axis=-1, kind="stable")
    xs_ref = np.take_along_axis(x_np, order[..., None], axis=1)
    np.testing.assert_array_equal(p_np, xs_ref.reshape(B, G, P, 3))

    # (d) Fused in-kernel quantisation+codes agree with the pure-XLA reference
    #     (tolerate the rare 1-ulp scale difference flipping a quantisation bin).
    codes_ref = np.asarray(jax.jit(_hilbert_codes_ref)(x))
    mismatch = float(np.mean(codes != codes_ref))
    assert mismatch < 0.05, f"kernel/XLA Hilbert-code mismatch fraction {mismatch}"

    print("KERNEL_OK")
</pallas_src>

<mosaic_0001>
module attributes {stable_mosaic.version = 11 : i64} {
  func.func @_hilbert_code_kernel(%arg0: i32, %arg1: memref<1x3x4x128xf32, #tpu.memory_space<vmem>>, %arg2: memref<1x4x128xi32, #tpu.memory_space<vmem>>) attributes {dimension_semantics = [#tpu.dimension_semantics<parallel>], iteration_bounds = array<i64: 2>, scalar_prefetch = 0 : i64, scratch_operands = 0 : i64, tpu.core_type = #tpu.core_type<tc>, window_params = [{transform_indices = @transform_0, window_bounds = array<i64: 1, 3, 4, 128>}, {transform_indices = @transform_1, window_bounds = array<i64: 1, 4, 128>}]} {
    %c0 = arith.constant 0 : index
    %c0_0 = arith.constant 0 : index
    %c0_1 = arith.constant 0 : index
    %c0_2 = arith.constant 0 : index
    %0 = vector.load %arg1[%c0, %c0_0, %c0_1, %c0_2] : memref<1x3x4x128xf32, #tpu.memory_space<vmem>>, vector<1x3x4x128xf32>
    %1 = vector.extract_strided_slice %0 {offsets = [0, 0, 0, 0], sizes = [1, 1, 4, 128], strides = [1, 1, 1, 1]} : vector<1x3x4x128xf32> to vector<1x1x4x128xf32>
    %2 = vector.shape_cast %1 : vector<1x1x4x128xf32> to vector<1x4x128xf32>
    %3 = vector.extract_strided_slice %0 {offsets = [0, 1, 0, 0], sizes = [1, 1, 4, 128], strides = [1, 1, 1, 1]} : vector<1x3x4x128xf32> to vector<1x1x4x128xf32>
    %4 = vector.shape_cast %3 : vector<1x1x4x128xf32> to vector<1x4x128xf32>
    %5 = vector.extract_strided_slice %0 {offsets = [0, 2, 0, 0], sizes = [1, 1, 4, 128], strides = [1, 1, 1, 1]} : vector<1x3x4x128xf32> to vector<1x1x4x128xf32>
    %6 = vector.shape_cast %5 : vector<1x1x4x128xf32> to vector<1x4x128xf32>
    %7 = arith.minimumf %2, %4 : vector<1x4x128xf32>
    %8 = arith.minimumf %7, %6 : vector<1x4x128xf32>
    %9 = arith.maximumf %2, %4 : vector<1x4x128xf32>
    %10 = arith.maximumf %9, %6 : vector<1x4x128xf32>
    %cst = arith.constant dense<0x7F800000> : vector<1x4xf32>
    %11 = vector.multi_reduction <minimumf>, %8, %cst [2] : vector<1x4x128xf32> to vector<1x4xf32>
    %12 = vector.shape_cast %11 : vector<1x4xf32> to vector<1x4x1xf32>
    %cst_3 = arith.constant dense<0x7F800000> : vector<1x1xf32>
    %13 = vector.multi_reduction <minimumf>, %12, %cst_3 [1] : vector<1x4x1xf32> to vector<1x1xf32>
    %14 = vector.shape_cast %13 : vector<1x1xf32> to vector<1x1x1xf32>
    %cst_4 = arith.constant dense<0xFF800000> : vector<1x4xf32>
    %15 = vector.multi_reduction <maximumf>, %10, %cst_4 [2] : vector<1x4x128xf32> to vector<1x4xf32>
    %16 = vector.shape_cast %15 : vector<1x4xf32> to vector<1x4x1xf32>
    %cst_5 = arith.constant dense<0xFF800000> : vector<1x1xf32>
    %17 = vector.multi_reduction <maximumf>, %16, %cst_5 [1] : vector<1x4x1xf32> to vector<1x1xf32>
    %18 = vector.shape_cast %17 : vector<1x1xf32> to vector<1x1x1xf32>
    %19 = arith.subf %18, %14 : vector<1x1x1xf32>
    %cst_6 = arith.constant 9.99999996E-13 : f32
    %20 = vector.broadcast %cst_6 : f32 to vector<1x1x1xf32>
    %21 = arith.maximumf %19, %20 : vector<1x1x1xf32>
    %cst_7 = arith.constant 1.023000e+03 : f32
    %22 = vector.broadcast %cst_7 : f32 to vector<1x1x1xf32>
    %23 = arith.divf %22, %21 : vector<1x1x1xf32>
    %24 = vector.broadcast %14 : vector<1x1x1xf32> to vector<1x4x128xf32>
    %25 = arith.subf %2, %24 : vector<1x4x128xf32>
    %26 = vector.broadcast %23 : vector<1x1x1xf32> to vector<1x4x128xf32>
    %27 = arith.mulf %25, %26 : vector<1x4x128xf32>
    %cst_8 = arith.constant 0.000000e+00 : f32
    %cst_9 = arith.constant 1.023000e+03 : f32
    %28 = vector.broadcast %cst_8 : f32 to vector<1x4x128xf32>
    %29 = arith.maximumf %28, %27 : vector<1x4x128xf32>
    %30 = vector.broadcast %cst_9 : f32 to vector<1x4x128xf32>
    %31 = arith.minimumf %30, %29 : vector<1x4x128xf32>
    %32 = arith.fptosi %31 : vector<1x4x128xf32> to vector<1x4x128xi32>
    %33 = vector.broadcast %14 : vector<1x1x1xf32> to vector<1x4x128xf32>
    %34 = arith.subf %4, %33 : vector<1x4x128xf32>
    %35 = vector.broadcast %23 : vector<1x1x1xf32> to vector<1x4x128xf32>
    %36 = arith.mulf %34, %35 : vector<1x4x128xf32>
    %cst_10 = arith.constant 0.000000e+00 : f32
    %cst_11 = arith.constant 1.023000e+03 : f32
    %37 = vector.broadcast %cst_10 : f32 to vector<1x4x128xf32>
    %38 = arith.maximumf %37, %36 : vector<1x4x128xf32>
    %39 = vector.broadcast %cst_11 : f32 to vector<1x4x128xf32>
    %40 = arith.minimumf %39, %38 : vector<1x4x128xf32>
    %41 = arith.fptosi %40 : vector<1x4x128xf32> to vector<1x4x128xi32>
    %42 = vector.broadcast %14 : vector<1x1x1xf32> to vector<1x4x128xf32>
    %43 = arith.subf %6, %42 : vector<1x4x128xf32>
    %44 = vector.broadcast %23 : vector<1x1x1xf32> to vector<1x4x128xf32>
    %45 = arith.mulf %43, %44 : vector<1x4x128xf32>
    %cst_12 = arith.constant 0.000000e+00 : f32
    %cst_13 = arith.constant 1.023000e+03 : f32
    %46 = vector.broadcast %cst_12 : f32 to vector<1x4x128xf32>
    %47 = arith.maximumf %46, %45 : vector<1x4x128xf32>
    %48 = vector.broadcast %cst_13 : f32 to vector<1x4x128xf32>
    %49 = arith.minimumf %48, %47 : vector<1x4x128xf32>
    %50 = arith.fptosi %49 : vector<1x4x128xf32> to vector<1x4x128xi32>
    %c512_i32 = arith.constant 512 : i32
    %51 = vector.broadcast %c512_i32 : i32 to vector<1x4x128xi32>
    %52 = arith.andi %32, %51 : vector<1x4x128xi32>
    %c0_i32 = arith.constant 0 : i32
    %53 = vector.broadcast %c0_i32 : i32 to vector<1x4x128xi32>
    %54 = arith.cmpi ne, %52, %53 : vector<1x4x128xi32>
    %c511_i32 = arith.constant 511 : i32
    %55 = vector.broadcast %c511_i32 : i32 to vector<1x4x128xi32>
    %56 = arith.xori %32, %55 : vector<1x4x128xi32>
    %57 = arith.select %54, %56, %32 : vector<1x4x128xi1>, vector<1x4x128xi32>
    %c512_i32_14 = arith.constant 512 : i32
    %58 = vector.broadcast %c512_i32_14 : i32 to vector<1x4x128xi32>
    %59 = arith.andi %41, %58 : vector<1x4x128xi32>
    %c0_i32_15 = arith.constant 0 : i32
    %60 = vector.broadcast %c0_i32_15 : i32 to vector<1x4x128xi32>
    %61 = arith.cmpi ne, %59, %60 : vector<1x4x128xi32>
    %62 = arith.xori %57, %41 : vector<1x4x128xi32>
    %c511_i32_16 = arith.constant 511 : i32
    %63 = vector.broadcast %c511_i32_16 : i32 to vector<1x4x128xi32>
    %64 = arith.andi %62, %63 : vector<1x4x128xi32>
    %c511_i32_17 = arith.constant 511 : i32
    %65 = vector.broadcast %c511_i32_17 : i32 to vector<1x4x128xi32>
    %66 = arith.xori %57, %65 : vector<1x4x128xi32>
    %67 = arith.xori %57, %64 : vector<1x4x128xi32>
    %68 = arith.select %61, %66, %67 : vector<1x4x128xi1>, vector<1x4x128xi32>
    %69 = arith.xori %41, %64 : vector<1x4x128xi32>
    %70 = arith.select %61, %41, %69 : vector<1x4x128xi1>, vector<1x4x128xi32>
    %c512_i32_18 = arith.constant 512 : i32
    %71 = vector.broadcast %c512_i32_18 : i32 to vector<1x4x128xi32>
    %72 = arith.andi %50, %71 : vector<1x4x128xi32>
    %c0_i32_19 = arith.constant 0 : i32
    %73 = vector.broadcast %c0_i32_19 : i32 to vector<1x4x128xi32>
    %74 = arith.cmpi ne, %72, %73 : vector<1x4x128xi32>
    %75 = arith.xori %68, %50 : vector<1x4x128xi32>
    %c511_i32_20 = arith.constant 511 : i32
    %76 = vector.broadcast %c511_i32_20 : i32 to vector<1x4x128xi32>
    %77 = arith.andi %75, %76 : vector<1x4x128xi32>
    %c511_i32_21 = arith.constant 511 : i32
    %78 = vector.broadcast %c511_i32_21 : i32 to vector<1x4x128xi32>
    %79 = arith.xori %68, %78 : vector<1x4x128xi32>
    %80 = arith.xori %68, %77 : vector<1x4x128xi32>
    %81 = arith.select %74, %79, %80 : vector<1x4x128xi1>, vector<1x4x128xi32>
    %82 = arith.xori %50, %77 : vector<1x4x128xi32>
    %83 = arith.select %74, %50, %82 : vector<1x4x128xi1>, vector<1x4x128xi32>
    %c256_i32 = arith.constant 256 : i32
    %84 = vector.broadcast %c256_i32 : i32 to vector<1x4x128xi32>
    %85 = arith.andi %81, %84 : vector<1x4x128xi32>
    %c0_i32_22 = arith.constant 0 : i32
    %86 = vector.broadcast %c0_i32_22 : i32 to vector<1x4x128xi32>
    %87 = arith.cmpi ne, %85, %86 : vector<1x4x128xi32>
    %c255_i32 = arith.constant 255 : i32
    %88 = vector.broadcast %c255_i32 : i32 to vector<1x4x128xi32>
    %89 = arith.xori %81, %88 : vector<1x4x128xi32>
    %90 = arith.select %87, %89, %81 : vector<1x4x128xi1>, vector<1x4x128xi32>
    %c256_i32_23 = arith.constant 256 : i32
    %91 = vector.broadcast %c256_i32_23 : i32 to vector<1x4x128xi32>
    %92 = arith.andi %70, %91 : vector<1x4x128xi32>
    %c0_i32_24 = arith.constant 0 : i32
    %93 = vector.broadcast %c0_i32_24 : i32 to vector<1x4x128xi32>
    %94 = arith.cmpi ne, %92, %93 : vector<1x4x128xi32>
    %95 = arith.xori %90, %70 : vector<1x4x128xi32>
    %c255_i32_25 = arith.constant 255 : i32
    %96 = vector.broadcast %c255_i32_25 : i32 to vector<1x4x128xi32>
    %97 = arith.andi %95, %96 : vector<1x4x128xi32>
    %c255_i32_26 = arith.constant 255 : i32
    %98 = vector.broadcast %c255_i32_26 : i32 to vector<1x4x128xi32>
    %99 = arith.xori %90, %98 : vector<1x4x128xi32>
    %100 = arith.xori %90, %97 : vector<1x4x128xi32>
    %101 = arith.select %94, %99, %100 : vector<1x4x128xi1>, vector<1x4x128xi32>
    %102 = arith.xori %70, %97 : vector<1x4x128xi32>
    %103 = arith.select %94, %70, %102 : vector<1x4x128xi1>, vector<1x4x128xi32>
    %c256_i32_27 = arith.constant 256 : i32
    %104 = vector.broadcast %c256_i32_27 : i32 to vector<1x4x128xi32>
    %105 = arith.andi %83, %104 : vector<1x4x128xi32>
    %c0_i32_28 = arith.constant 0 : i32
    %106 = vector.broadcast %c0_i32_28 : i32 to vector<1x4x128xi32>
    %107 = arith.cmpi ne, %105, %106 : vector<1x4x128xi32>
    %108 = arith.xori %101, %83 : vector<1x4x128xi32>
    %c255_i32_29 = arith.constant 255 : i32
    %109 = vector.broadcast %c255_i32_29 : i32 to vector<1x4x128xi32>
    %110 = arith.andi %108, %109 : vector<1x4x128xi32>
    %c255_i32_30 = arith.constant 255 : i32
    %111 = vector.broadcast %c255_i32_30 : i32 to vector<1x4x128xi32>
    %112 = arith.xori %101, %111 : vector<1x4x128xi32>
    %113 = arith.xori %101, %110 : vector<1x4x128xi32>
    %114 = arith.select %107, %112, %113 : vector<1x4x128xi1>, vector<1x4x128xi32>
    %115 = arith.xori %83, %110 : vector<1x4x128xi32>
    %116 = arith.select %107, %83, %115 : vector<1x4x128xi1>, vector<1x4x128xi32>
    %c128_i32 = arith.constant 128 : i32
    %117 = vector.broadcast %c128_i32 : i32 to vector<1x4x128xi32>
    %118 = arith.andi %114, %117 : vector<1x4x128xi32>
    %c0_i32_31 = arith.constant 0 : i32
    %119 = vector.broadcast %c0_i32_31 : i32 to vector<1x4x128xi32>
    %120 = arith.cmpi ne, %118, %119 : vector<1x4x128xi32>
    %c127_i32 = arith.constant 127 : i32
    %121 = vector.broadcast %c127_i32 : i32 to vector<1x4x128xi32>
    %122 = arith.xori %114, %121 : vector<1x4x128xi32>
    %123 = arith.select %120, %122, %114 : vector<1x4x128xi1>, vector<1x4x128xi32>
    %c128_i32_32 = arith.constant 128 : i32
    %124 = vector.broadcast %c128_i32_32 : i32 to vector<1x4x128xi32>
    %125 = arith.andi %103, %124 : vector<1x4x128xi32>
    %c0_i32_33 = arith.constant 0 : i32
    %126 = vector.broadcast %c0_i32_33 : i32 to vector<1x4x128xi32>
    %127 = arith.cmpi ne, %125, %126 : vector<1x4x128xi32>
    %128 = arith.xori %123, %103 : vector<1x4x128xi32>
    %c127_i32_34 = arith.constant 127 : i32
    %129 = vector.broadcast %c127_i32_34 : i32 to vector<1x4x128xi32>
    %130 = arith.andi %128, %129 : vector<1x4x128xi32>
    %c127_i32_35 = arith.constant 127 : i32
    %131 = vector.broadcast %c127_i32_35 : i32 to vector<1x4x128xi32>
    %132 = arith.xori %123, %131 : vector<1x4x128xi32>
    %133 = arith.xori %123, %130 : vector<1x4x128xi32>
    %134 = arith.select %127, %132, %133 : vector<1x4x128xi1>, vector<1x4x128xi32>
    %135 = arith.xori %103, %130 : vector<1x4x128xi32>
    %136 = arith.select %127, %103, %135 : vector<1x4x128xi1>, vector<1x4x128xi32>
    %c128_i32_36 = arith.constant 128 : i32
    %137 = vector.broadcast %c128_i32_36 : i32 to vector<1x4x128xi32>
    %138 = arith.andi %116, %137 : vector<1x4x128xi32>
    %c0_i32_37 = arith.constant 0 : i32
    %139 = vector.broadcast %c0_i32_37 : i32 to vector<1x4x128xi32>
    %140 = arith.cmpi ne, %138, %139 : vector<1x4x128xi32>
    %141 = arith.xori %134, %116 : vector<1x4x128xi32>
    %c127_i32_38 = arith.constant 127 : i32
    %142 = vector.broadcast %c127_i32_38 : i32 to vector<1x4x128xi32>
    %143 = arith.andi %141, %142 : vector<1x4x128xi32>
    %c127_i32_39 = arith.constant 127 : i32
    %144 = vector.broadcast %c127_i32_39 : i32 to vector<1x4x128xi32>
    %145 = arith.xori %134, %144 : vector<1x4x128xi32>
    %146 = arith.xori %134, %143 : vector<1x4x128xi32>
    %147 = arith.select %140, %145, %146 : vector<1x4x128xi1>, vector<1x4x128xi32>
    %148 = arith.xori %116, %143 : vector<1x4x128xi32>
    %149 = arith.select %140, %116, %148 : vector<1x4x128xi1>, vector<1x4x128xi32>
    %c64_i32 = arith.constant 64 : i32
    %150 = vector.broadcast %c64_i32 : i32 to vector<1x4x128xi32>
    %151 = arith.andi %147, %150 : vector<1x4x128xi32>
    %c0_i32_40 = arith.constant 0 : i32
    %152 = vector.broadcast %c0_i32_40 : i32 to vector<1x4x128xi32>
    %153 = arith.cmpi ne, %151, %152 : vector<1x4x128xi32>
    %c63_i32 = arith.constant 63 : i32
    %154 = vector.broadcast %c63_i32 : i32 to vector<1x4x128xi32>
    %155 = arith.xori %147, %154 : vector<1x4x128xi32>
    %156 = arith.select %153, %155, %147 : vector<1x4x128xi1>, vector<1x4x128xi32>
    %c64_i32_41 = arith.constant 64 : i32
    %157 = vector.broadcast %c64_i32_41 : i32 to vector<1x4x128xi32>
    %158 = arith.andi %136, %157 : vector<1x4x128xi32>
    %c0_i32_42 = arith.constant 0 : i32
    %159 = vector.broadcast %c0_i32_42 : i32 to vector<1x4x128xi32>
    %160 = arith.cmpi ne, %158, %159 : vector<1x4x128xi32>
    %161 = arith.xori %156, %136 : vector<1x4x128xi32>
    %c63_i32_43 = arith.constant 63 : i32
    %162 = vector.broadcast %c63_i32_43 : i32 to vector<1x4x128xi32>
    %163 = arith.andi %161, %162 : vector<1x4x128xi32>
    %c63_i32_44 = arith.constant 63 : i32
    %164 = vector.broadcast %c63_i32_44 : i32 to vector<1x4x128xi32>
    %165 = arith.xori %156, %164 : vector<1x4x128xi32>
    %166 = arith.xori %156, %163 : vector<1x4x128xi32>
    %167 = arith.select %160, %165, %166 : vector<1x4x128xi1>, vector<1x4x128xi32>
    %168 = arith.xori %136, %163 : vector<1x4x128xi32>
    %169 = arith.select %160, %136, %168 : vector<1x4x128xi1>, vector<1x4x128xi32>
    %c64_i32_45 = arith.constant 64 : i32
    %170 = vector.broadcast %c64_i32_45 : i32 to vector<1x4x128xi32>
    %171 = arith.andi %149, %170 : vector<1x4x128xi32>
    %c0_i32_46 = arith.constant 0 : i32
    %172 = vector.broadcast %c0_i32_46 : i32 to vector<1x4x128xi32>
    %173 = arith.cmpi ne, %171, %172 : vector<1x4x128xi32>
    %174 = arith.xori %167, %149 : vector<1x4x128xi32>
    %c63_i32_47 = arith.constant 63 : i32
    %175 = vector.broadcast %c63_i32_47 : i32 to vector<1x4x128xi32>
    %176 = arith.andi %174, %175 : vector<1x4x128xi32>
    %c63_i32_48 = arith.constant 63 : i32
    %177 = vector.broadcast %c63_i32_48 : i32 to vector<1x4x128xi32>
    %178 = arith.xori %167, %177 : vector<1x4x128xi32>
    %179 = arith.xori %167, %176 : vector<1x4x128xi32>
    %180 = arith.select %173, %178, %179 : vector<1x4x128xi1>, vector<1x4x128xi32>
    %181 = arith.xori %149, %176 : vector<1x4x128xi32>
    %182 = arith.select %173, %149, %181 : vector<1x4x128xi1>, vector<1x4x128xi32>
    %c32_i32 = arith.constant 32 : i32
    %183 = vector.broadcast %c32_i32 : i32 to vector<1x4x128xi32>
    %184 = arith.andi %180, %183 : vector<1x4x128xi32>
    %c0_i32_49 = arith.constant 0 : i32
    %185 = vector.broadcast %c0_i32_49 : i32 to vector<1x4x128xi32>
    %186 = arith.cmpi ne, %184, %185 : vector<1x4x128xi32>
    %c31_i32 = arith.constant 31 : i32
    %187 = vector.broadcast %c31_i32 : i32 to vector<1x4x128xi32>
    %188 = arith.xori %180, %187 : vector<1x4x128xi32>
    %189 = arith.select %186, %188, %180 : vector<1x4x128xi1>, vector<1x4x128xi32>
    %c32_i32_50 = arith.constant 32 : i32
    %190 = vector.broadcast %c32_i32_50 : i32 to vector<1x4x128xi32>
    %191 = arith.andi %169, %190 : vector<1x4x128xi32>
    %c0_i32_51 = arith.constant 0 : i32
    %192 = vector.broadcast %c0_i32_51 : i32 to vector<1x4x128xi32>
    %193 = arith.cmpi ne, %191, %192 : vector<1x4x128xi32>
    %194 = arith.xori %189, %169 : vector<1x4x128xi32>
    %c31_i32_52 = arith.constant 31 : i32
    %195 = vector.broadcast %c31_i32_52 : i32 to vector<1x4x128xi32>
    %196 = arith.andi %194, %195 : vector<1x4x128xi32>
    %c31_i32_53 = arith.constant 31 : i32
    %197 = vector.broadcast %c31_i32_53 : i32 to vector<1x4x128xi32>
    %198 = arith.xori %189, %197 : vector<1x4x128xi32>
    %199 = arith.xori %189, %196 : vector<1x4x128xi32>
    %200 = arith.select %193, %198, %199 : vector<1x4x128xi1>, vector<1x4x128xi32>
    %201 = arith.xori %169, %196 : vector<1x4x128xi32>
    %202 = arith.select %193, %169, %201 : vector<1x4x128xi1>, vector<1x4x128xi32>
    %c32_i32_54 = arith.constant 32 : i32
    %203 = vector.broadcast %c32_i32_54 : i32 to vector<1x4x128xi32>
    %204 = arith.andi %182, %203 : vector<1x4x128xi32>
    %c0_i32_55 = arith.constant 0 : i32
    %205 = vector.broadcast %c0_i32_55 : i32 to vector<1x4x128xi32>
    %206 = arith.cmpi ne, %204, %205 : vector<1x4x128xi32>
    %207 = arith.xori %200, %182 : vector<1x4x128xi32>
    %c31_i32_56 = arith.constant 31 : i32
    %208 = vector.broadcast %c31_i32_56 : i32 to vector<1x4x128xi32>
    %209 = arith.andi %207, %208 : vector<1x4x128xi32>
    %c31_i32_57 = arith.constant 31 : i32
    %210 = vector.broadcast %c31_i32_57 : i32 to vector<1x4x128xi32>
    %211 = arith.xori %200, %210 : vector<1x4x128xi32>
    %212 = arith.xori %200, %209 : vector<1x4x128xi32>
    %213 = arith.select %206, %211, %212 : vector<1x4x128xi1>, vector<1x4x128xi32>
    %214 = arith.xori %182, %209 : vector<1x4x128xi32>
    %215 = arith.select %206, %182, %214 : vector<1x4x128xi1>, vector<1x4x128xi32>
    %c16_i32 = arith.constant 16 : i32
    %216 = vector.broadcast %c16_i32 : i32 to vector<1x4x128xi32>
    %217 = arith.andi %213, %216 : vector<1x4x128xi32>
    %c0_i32_58 = arith.constant 0 : i32
    %218 = vector.broadcast %c0_i32_58 : i32 to vector<1x4x128xi32>
    %219 = arith.cmpi ne, %217, %218 : vector<1x4x128xi32>
    %c15_i32 = arith.constant 15 : i32
    %220 = vector.broadcast %c15_i32 : i32 to vector<1x4x128xi32>
    %221 = arith.xori %213, %220 : vector<1x4x128xi32>
    %222 = arith.select %219, %221, %213 : vector<1x4x128xi1>, vector<1x4x128xi32>
    %c16_i32_59 = arith.constant 16 : i32
    %223 = vector.broadcast %c16_i32_59 : i32 to vector<1x4x128xi32>
    %224 = arith.andi %202, %223 : vector<1x4x128xi32>
    %c0_i32_60 = arith.constant 0 : i32
    %225 = vector.broadcast %c0_i32_60 : i32 to vector<1x4x128xi32>
    %226 = arith.cmpi ne, %224, %225 : vector<1x4x128xi32>
    %227 = arith.xori %222, %202 : vector<1x4x128xi32>
    %c15_i32_61 = arith.constant 15 : i32
    %228 = vector.broadcast %c15_i32_61 : i32 to vector<1x4x128xi32>
    %229 = arith.andi %227, %228 : vector<1x4x128xi32>
    %c15_i32_62 = arith.constant 15 : i32
    %230 = vector.broadcast %c15_i32_62 : i32 to vector<1x4x128xi32>
    %231 = arith.xori %222, %230 : vector<1x4x128xi32>
    %232 = arith.xori %222, %229 : vector<1x4x128xi32>
    %233 = arith.select %226, %231, %232 : vector<1x4x128xi1>, vector<1x4x128xi32>
    %234 = arith.xori %202, %229 : vector<1x4x128xi32>
    %235 = arith.select %226, %202, %234 : vector<1x4x128xi1>, vector<1x4x128xi32>
    %c16_i32_63 = arith.constant 16 : i32
    %236 = vector.broadcast %c16_i32_63 : i32 to vector<1x4x128xi32>
    %237 = arith.andi %215, %236 : vector<1x4x128xi32>
    %c0_i32_64 = arith.constant 0 : i32
    %238 = vector.broadcast %c0_i32_64 : i32 to vector<1x4x128xi32>
    %239 = arith.cmpi ne, %237, %238 : vector<1x4x128xi32>
    %240 = arith.xori %233, %215 : vector<1x4x128xi32>
    %c15_i32_65 = arith.constant 15 : i32
    %241 = vector.broadcast %c15_i32_65 : i32 to vector<1x4x128xi32>
    %242 = arith.andi %240, %241 : vector<1x4x128xi32>
    %c15_i32_66 = arith.constant 15 : i32
    %243 = vector.broadcast %c15_i32_66 : i32 to vector<1x4x128xi32>
    %244 = arith.xori %233, %243 : vector<1x4x128xi32>
    %245 = arith.xori %233, %242 : vector<1x4x128xi32>
    %246 = arith.select %239, %244, %245 : vector<1x4x128xi1>, vector<1x4x128xi32>
    %247 = arith.xori %215, %242 : vector<1x4x128xi32>
    %248 = arith.select %239, %215, %247 : vector<1x4x128xi1>, vector<1x4x128xi32>
    %c8_i32 = arith.constant 8 : i32
    %249 = vector.broadcast %c8_i32 : i32 to vector<1x4x128xi32>
    %250 = arith.andi %246, %249 : vector<1x4x128xi32>
    %c0_i32_67 = arith.constant 0 : i32
    %251 = vector.broadcast %c0_i32_67 : i32 to vector<1x4x128xi32>
    %252 = arith.cmpi ne, %250, %251 : vector<1x4x128xi32>
    %c7_i32 = arith.constant 7 : i32
    %253 = vector.broadcast %c7_i32 : i32 to vector<1x4x128xi32>
    %254 = arith.xori %246, %253 : vector<1x4x128xi32>
    %255 = arith.select %252, %254, %246 : vector<1x4x128xi1>, vector<1x4x128xi32>
    %c8_i32_68 = arith.constant 8 : i32
    %256 = vector.broadcast %c8_i32_68 : i32 to vector<1x4x128xi32>
    %257 = arith.andi %235, %256 : vector<1x4x128xi32>
    %c0_i32_69 = arith.constant 0 : i32
    %258 = vector.broadcast %c0_i32_69 : i32 to vector<1x4x128xi32>
    %259 = arith.cmpi ne, %257, %258 : vector<1x4x128xi32>
    %260 = arith.xori %255, %235 : vector<1x4x128xi32>
    %c7_i32_70 = arith.constant 7 : i32
    %261 = vector.broadcast %c7_i32_70 : i32 to vector<1x4x128xi32>
    %262 = arith.andi %260, %261 : vector<1x4x128xi32>
    %c7_i32_71 = arith.constant 7 : i32
    %263 = vector.broadcast %c7_i32_71 : i32 to vector<1x4x128xi32>
    %264 = arith.xori %255, %263 : vector<1x4x128xi32>
    %265 = arith.xori %255, %262 : vector<1x4x128xi32>
    %266 = arith.select %259, %264, %265 : vector<1x4x128xi1>, vector<1x4x128xi32>
    %267 = arith.xori %235, %262 : vector<1x4x128xi32>
    %268 = arith.select %259, %235, %267 : vector<1x4x128xi1>, vector<1x4x128xi32>
    %c8_i32_72 = arith.constant 8 : i32
    %269 = vector.broadcast %c8_i32_72 : i32 to vector<1x4x128xi32>
    %270 = arith.andi %248, %269 : vector<1x4x128xi32>
    %c0_i32_73 = arith.constant 0 : i32
    %271 = vector.broadcast %c0_i32_73 : i32 to vector<1x4x128xi32>
    %272 = arith.cmpi ne, %270, %271 : vector<1x4x128xi32>
    %273 = arith.xori %266, %248 : vector<1x4x128xi32>
    %c7_i32_74 = arith.constant 7 : i32
    %274 = vector.broadcast %c7_i32_74 : i32 to vector<1x4x128xi32>
    %275 = arith.andi %273, %274 : vector<1x4x128xi32>
    %c7_i32_75 = arith.constant 7 : i32
    %276 = vector.broadcast %c7_i32_75 : i32 to vector<1x4x128xi32>
    %277 = arith.xori %266, %276 : vector<1x4x128xi32>
    %278 = arith.xori %266, %275 : vector<1x4x128xi32>
    %279 = arith.select %272, %277, %278 : vector<1x4x128xi1>, vector<1x4x128xi32>
    %280 = arith.xori %248, %275 : vector<1x4x128xi32>
    %281 = arith.select %272, %248, %280 : vector<1x4x128xi1>, vector<1x4x128xi32>
    %c4_i32 = arith.constant 4 : i32
    %282 = vector.broadcast %c4_i32 : i32 to vector<1x4x128xi32>
    %283 = arith.andi %279, %282 : vector<1x4x128xi32>
    %c0_i32_76 = arith.constant 0 : i32
    %284 = vector.broadcast %c0_i32_76 : i32 to vector<1x4x128xi32>
    %285 = arith.cmpi ne, %283, %284 : vector<1x4x128xi32>
    %c3_i32 = arith.constant 3 : i32
    %286 = vector.broadcast %c3_i32 : i32 to vector<1x4x128xi32>
    %287 = arith.xori %279, %286 : vector<1x4x128xi32>
    %288 = arith.select %285, %287, %279 : vector<1x4x128xi1>, vector<1x4x128xi32>
    %c4_i32_77 = arith.constant 4 : i32
    %289 = vector.broadcast %c4_i32_77 : i32 to vector<1x4x128xi32>
    %290 = arith.andi %268, %289 : vector<1x4x128xi32>
    %c0_i32_78 = arith.constant 0 : i32
    %291 = vector.broadcast %c0_i32_78 : i32 to vector<1x4x128xi32>
    %292 = arith.cmpi ne, %290, %291 : vector<1x4x128xi32>
    %293 = arith.xori %288, %268 : vector<1x4x128xi32>
    %c3_i32_79 = arith.constant 3 : i32
    %294 = vector.broadcast %c3_i32_79 : i32 to vector<1x4x128xi32>
    %295 = arith.andi %293, %294 : vector<1x4x128xi32>
    %c3_i32_80 = arith.constant 3 : i32
    %296 = vector.broadcast %c3_i32_80 : i32 to vector<1x4x128xi32>
    %297 = arith.xori %288, %296 : vector<1x4x128xi32>
    %298 = arith.xori %288, %295 : vector<1x4x128xi32>
    %299 = arith.select %292, %297, %298 : vector<1x4x128xi1>, vector<1x4x128xi32>
    %300 = arith.xori %268, %295 : vector<1x4x128xi32>
    %301 = arith.select %292, %268, %300 : vector<1x4x128xi1>, vector<1x4x128xi32>
    %c4_i32_81 = arith.constant 4 : i32
    %302 = vector.broadcast %c4_i32_81 : i32 to vector<1x4x128xi32>
    %303 = arith.andi %281, %302 : vector<1x4x128xi32>
    %c0_i32_82 = arith.constant 0 : i32
    %304 = vector.broadcast %c0_i32_82 : i32 to vector<1x4x128xi32>
    %305 = arith.cmpi ne, %303, %304 : vector<1x4x128xi32>
    %306 = arith.xori %299, %281 : vector<1x4x128xi32>
    %c3_i32_83 = arith.constant 3 : i32
    %307 = vector.broadcast %c3_i32_83 : i32 to vector<1x4x128xi32>
    %308 = arith.andi %306, %307 : vector<1x4x128xi32>
    %c3_i32_84 = arith.constant 3 : i32
    %309 = vector.broadcast %c3_i32_84 : i32 to vector<1x4x128xi32>
    %310 = arith.xori %299, %309 : vector<1x4x128xi32>
    %311 = arith.xori %299, %308 : vector<1x4x128xi32>
    %312 = arith.select %305, %310, %311 : vector<1x4x128xi1>, vector<1x4x128xi32>
    %313 = arith.xori %281, %308 : vector<1x4x128xi32>
    %314 = arith.select %305, %281, %313 : vector<1x4x128xi1>, vector<1x4x128xi32>
    %c2_i32 = arith.constant 2 : i32
    %315 = vector.broadcast %c2_i32 : i32 to vector<1x4x128xi32>
    %316 = arith.andi %312, %315 : vector<1x4x128xi32>
    %c0_i32_85 = arith.constant 0 : i32
    %317 = vector.broadcast %c0_i32_85 : i32 to vector<1x4x128xi32>
    %318 = arith.cmpi ne, %316, %317 : vector<1x4x128xi32>
    %c1_i32 = arith.constant 1 : i32
    %319 = vector.broadcast %c1_i32 : i32 to vector<1x4x128xi32>
    %320 = arith.xori %312, %319 : vector<1x4x128xi32>
    %321 = arith.select %318, %320, %312 : vector<1x4x128xi1>, vector<1x4x128xi32>
    %c2_i32_86 = arith.constant 2 : i32
    %322 = vector.broadcast %c2_i32_86 : i32 to vector<1x4x128xi32>
    %323 = arith.andi %301, %322 : vector<1x4x128xi32>
    %c0_i32_87 = arith.constant 0 : i32
    %324 = vector.broadcast %c0_i32_87 : i32 to vector<1x4x128xi32>
    %325 = arith.cmpi ne, %323, %324 : vector<1x4x128xi32>
    %326 = arith.xori %321, %301 : vector<1x4x128xi32>
    %c1_i32_88 = arith.constant 1 : i32
    %327 = vector.broadcast %c1_i32_88 : i32 to vector<1x4x128xi32>
    %328 = arith.andi %326, %327 : vector<1x4x128xi32>
    %c1_i32_89 = arith.constant 1 : i32
    %329 = vector.broadcast %c1_i32_89 : i32 to vector<1x4x128xi32>
    %330 = arith.xori %321, %329 : vector<1x4x128xi32>
    %331 = arith.xori %321, %328 : vector<1x4x128xi32>
    %332 = arith.select %325, %330, %331 : vector<1x4x128xi1>, vector<1x4x128xi32>
    %333 = arith.xori %301, %328 : vector<1x4x128xi32>
    %334 = arith.select %325, %301, %333 : vector<1x4x128xi1>, vector<1x4x128xi32>
    %c2_i32_90 = arith.constant 2 : i32
    %335 = vector.broadcast %c2_i32_90 : i32 to vector<1x4x128xi32>
    %336 = arith.andi %314, %335 : vector<1x4x128xi32>
    %c0_i32_91 = arith.constant 0 : i32
    %337 = vector.broadcast %c0_i32_91 : i32 to vector<1x4x128xi32>
    %338 = arith.cmpi ne, %336, %337 : vector<1x4x128xi32>
    %339 = arith.xori %332, %314 : vector<1x4x128xi32>
    %c1_i32_92 = arith.constant 1 : i32
    %340 = vector.broadcast %c1_i32_92 : i32 to vector<1x4x128xi32>
    %341 = arith.andi %339, %340 : vector<1x4x128xi32>
    %c1_i32_93 = arith.constant 1 : i32
    %342 = vector.broadcast %c1_i32_93 : i32 to vector<1x4x128xi32>
    %343 = arith.xori %332, %342 : vector<1x4x128xi32>
    %344 = arith.xori %332, %341 : vector<1x4x128xi32>
    %345 = arith.select %338, %343, %344 : vector<1x4x128xi1>, vector<1x4x128xi32>
    %346 = arith.xori %314, %341 : vector<1x4x128xi32>
    %347 = arith.select %338, %314, %346 : vector<1x4x128xi1>, vector<1x4x128xi32>
    %348 = arith.xori %334, %345 : vector<1x4x128xi32>
    %349 = arith.xori %347, %348 : vector<1x4x128xi32>
    %c0_i32_94 = arith.constant 0 : i32
    %350 = vector.broadcast %c0_i32_94 : i32 to vector<1x4x128xi32>
    %c512_i32_95 = arith.constant 512 : i32
    %351 = vector.broadcast %c512_i32_95 : i32 to vector<1x4x128xi32>
    %352 = arith.andi %349, %351 : vector<1x4x128xi32>
    %c0_i32_96 = arith.constant 0 : i32
    %353 = vector.broadcast %c0_i32_96 : i32 to vector<1x4x128xi32>
    %354 = arith.cmpi ne, %352, %353 : vector<1x4x128xi32>
    %c511_i32_97 = arith.constant 511 : i32
    %355 = vector.broadcast %c511_i32_97 : i32 to vector<1x4x128xi32>
    %356 = arith.xori %350, %355 : vector<1x4x128xi32>
    %357 = arith.select %354, %356, %350 : vector<1x4x128xi1>, vector<1x4x128xi32>
    %c256_i32_98 = arith.constant 256 : i32
    %358 = vector.broadcast %c256_i32_98 : i32 to vector<1x4x128xi32>
    %359 = arith.andi %349, %358 : vector<1x4x128xi32>
    %c0_i32_99 = arith.constant 0 : i32
    %360 = vector.broadcast %c0_i32_99 : i32 to vector<1x4x128xi32>
    %361 = arith.cmpi ne, %359, %360 : vector<1x4x128xi32>
    %c255_i32_100 = arith.constant 255 : i32
    %362 = vector.broadcast %c255_i32_100 : i32 to vector<1x4x128xi32>
    %363 = arith.xori %357, %362 : vector<1x4x128xi32>
    %364 = arith.select %361, %363, %357 : vector<1x4x128xi1>, vector<1x4x128xi32>
    %c128_i32_101 = arith.constant 128 : i32
    %365 = vector.broadcast %c128_i32_101 : i32 to vector<1x4x128xi32>
    %366 = arith.andi %349, %365 : vector<1x4x128xi32>
    %c0_i32_102 = arith.constant 0 : i32
    %367 = vector.broadcast %c0_i32_102 : i32 to vector<1x4x128xi32>
    %368 = arith.cmpi ne, %366, %367 : vector<1x4x128xi32>
    %c127_i32_103 = arith.constant 127 : i32
    %369 = vector.broadcast %c127_i32_103 : i32 to vector<1x4x128xi32>
    %370 = arith.xori %364, %369 : vector<1x4x128xi32>
    %371 = arith.select %368, %370, %364 : vector<1x4x128xi1>, vector<1x4x128xi32>
    %c64_i32_104 = arith.constant 64 : i32
    %372 = vector.broadcast %c64_i32_104 : i32 to vector<1x4x128xi32>
    %373 = arith.andi %349, %372 : vector<1x4x128xi32>
    %c0_i32_105 = arith.constant 0 : i32
    %374 = vector.broadcast %c0_i32_105 : i32 to vector<1x4x128xi32>
    %375 = arith.cmpi ne, %373, %374 : vector<1x4x128xi32>
    %c63_i32_106 = arith.constant 63 : i32
    %376 = vector.broadcast %c63_i32_106 : i32 to vector<1x4x128xi32>
    %377 = arith.xori %371, %376 : vector<1x4x128xi32>
    %378 = arith.select %375, %377, %371 : vector<1x4x128xi1>, vector<1x4x128xi32>
    %c32_i32_107 = arith.constant 32 : i32
    %379 = vector.broadcast %c32_i32_107 : i32 to vector<1x4x128xi32>
    %380 = arith.andi %349, %379 : vector<1x4x128xi32>
    %c0_i32_108 = arith.constant 0 : i32
    %381 = vector.broadcast %c0_i32_108 : i32 to vector<1x4x128xi32>
    %382 = arith.cmpi ne, %380, %381 : vector<1x4x128xi32>
    %c31_i32_109 = arith.constant 31 : i32
    %383 = vector.broadcast %c31_i32_109 : i32 to vector<1x4x128xi32>
    %384 = arith.xori %378, %383 : vector<1x4x128xi32>
    %385 = arith.select %382, %384, %378 : vector<1x4x128xi1>, vector<1x4x128xi32>
    %c16_i32_110 = arith.constant 16 : i32
    %386 = vector.broadcast %c16_i32_110 : i32 to vector<1x4x128xi32>
    %387 = arith.andi %349, %386 : vector<1x4x128xi32>
    %c0_i32_111 = arith.constant 0 : i32
    %388 = vector.broadcast %c0_i32_111 : i32 to vector<1x4x128xi32>
    %389 = arith.cmpi ne, %387, %388 : vector<1x4x128xi32>
    %c15_i32_112 = arith.constant 15 : i32
    %390 = vector.broadcast %c15_i32_112 : i32 to vector<1x4x128xi32>
    %391 = arith.xori %385, %390 : vector<1x4x128xi32>
    %392 = arith.select %389, %391, %385 : vector<1x4x128xi1>, vector<1x4x128xi32>
    %c8_i32_113 = arith.constant 8 : i32
    %393 = vector.broadcast %c8_i32_113 : i32 to vector<1x4x128xi32>
    %394 = arith.andi %349, %393 : vector<1x4x128xi32>
    %c0_i32_114 = arith.constant 0 : i32
    %395 = vector.broadcast %c0_i32_114 : i32 to vector<1x4x128xi32>
    %396 = arith.cmpi ne, %394, %395 : vector<1x4x128xi32>
    %c7_i32_115 = arith.constant 7 : i32
    %397 = vector.broadcast %c7_i32_115 : i32 to vector<1x4x128xi32>
    %398 = arith.xori %392, %397 : vector<1x4x128xi32>
    %399 = arith.select %396, %398, %392 : vector<1x4x128xi1>, vector<1x4x128xi32>
    %c4_i32_116 = arith.constant 4 : i32
    %400 = vector.broadcast %c4_i32_116 : i32 to vector<1x4x128xi32>
    %401 = arith.andi %349, %400 : vector<1x4x128xi32>
    %c0_i32_117 = arith.constant 0 : i32
    %402 = vector.broadcast %c0_i32_117 : i32 to vector<1x4x128xi32>
    %403 = arith.cmpi ne, %401, %402 : vector<1x4x128xi32>
    %c3_i32_118 = arith.constant 3 : i32
    %404 = vector.broadcast %c3_i32_118 : i32 to vector<1x4x128xi32>
    %405 = arith.xori %399, %404 : vector<1x4x128xi32>
    %406 = arith.select %403, %405, %399 : vector<1x4x128xi1>, vector<1x4x128xi32>
    %c2_i32_119 = arith.constant 2 : i32
    %407 = vector.broadcast %c2_i32_119 : i32 to vector<1x4x128xi32>
    %408 = arith.andi %349, %407 : vector<1x4x128xi32>
    %c0_i32_120 = arith.constant 0 : i32
    %409 = vector.broadcast %c0_i32_120 : i32 to vector<1x4x128xi32>
    %410 = arith.cmpi ne, %408, %409 : vector<1x4x128xi32>
    %c1_i32_121 = arith.constant 1 : i32
    %411 = vector.broadcast %c1_i32_121 : i32 to vector<1x4x128xi32>
    %412 = arith.xori %406, %411 : vector<1x4x128xi32>
    %413 = arith.select %410, %412, %406 : vector<1x4x128xi1>, vector<1x4x128xi32>
    %414 = arith.xori %345, %413 : vector<1x4x128xi32>
    %415 = arith.xori %348, %413 : vector<1x4x128xi32>
    %416 = arith.xori %349, %413 : vector<1x4x128xi32>
    %c1023_i32 = arith.constant 1023 : i32
    %417 = vector.broadcast %c1023_i32 : i32 to vector<1x4x128xi32>
    %418 = arith.andi %414, %417 : vector<1x4x128xi32>
    %c16_i32_122 = arith.constant 16 : i32
    %419 = vector.broadcast %c16_i32_122 : i32 to vector<1x4x128xi32>
    %420 = arith.shli %418, %419 : vector<1x4x128xi32>
    %421 = arith.ori %418, %420 : vector<1x4x128xi32>
    %c50331903_i32 = arith.constant 50331903 : i32
    %422 = vector.broadcast %c50331903_i32 : i32 to vector<1x4x128xi32>
    %423 = arith.andi %421, %422 : vector<1x4x128xi32>
    %c8_i32_123 = arith.constant 8 : i32
    %424 = vector.broadcast %c8_i32_123 : i32 to vector<1x4x128xi32>
    %425 = arith.shli %423, %424 : vector<1x4x128xi32>
    %426 = arith.ori %423, %425 : vector<1x4x128xi32>
    %c50393103_i32 = arith.constant 50393103 : i32
    %427 = vector.broadcast %c50393103_i32 : i32 to vector<1x4x128xi32>
    %428 = arith.andi %426, %427 : vector<1x4x128xi32>
    %c4_i32_124 = arith.constant 4 : i32
    %429 = vector.broadcast %c4_i32_124 : i32 to vector<1x4x128xi32>
    %430 = arith.shli %428, %429 : vector<1x4x128xi32>
    %431 = arith.ori %428, %430 : vector<1x4x128xi32>
    %c51130563_i32 = arith.constant 51130563 : i32
    %432 = vector.broadcast %c51130563_i32 : i32 to vector<1x4x128xi32>
    %433 = arith.andi %431, %432 : vector<1x4x128xi32>
    %c2_i32_125 = arith.constant 2 : i32
    %434 = vector.broadcast %c2_i32_125 : i32 to vector<1x4x128xi32>
    %435 = arith.shli %433, %434 : vector<1x4x128xi32>
    %436 = arith.ori %433, %435 : vector<1x4x128xi32>
    %c153391689_i32 = arith.constant 153391689 : i32
    %437 = vector.broadcast %c153391689_i32 : i32 to vector<1x4x128xi32>
    %438 = arith.andi %436, %437 : vector<1x4x128xi32>
    %c2_i32_126 = arith.constant 2 : i32
    %439 = vector.broadcast %c2_i32_126 : i32 to vector<1x4x128xi32>
    %440 = arith.shli %438, %439 : vector<1x4x128xi32>
    %c1023_i32_127 = arith.constant 1023 : i32
    %441 = vector.broadcast %c1023_i32_127 : i32 to vector<1x4x128xi32>
    %442 = arith.andi %415, %441 : vector<1x4x128xi32>
    %c16_i32_128 = arith.constant 16 : i32
    %443 = vector.broadcast %c16_i32_128 : i32 to vector<1x4x128xi32>
    %444 = arith.shli %442, %443 : vector<1x4x128xi32>
    %445 = arith.ori %442, %444 : vector<1x4x128xi32>
    %c50331903_i32_129 = arith.constant 50331903 : i32
    %446 = vector.broadcast %c50331903_i32_129 : i32 to vector<1x4x128xi32>
    %447 = arith.andi %445, %446 : vector<1x4x128xi32>
    %c8_i32_130 = arith.constant 8 : i32
    %448 = vector.broadcast %c8_i32_130 : i32 to vector<1x4x128xi32>
    %449 = arith.shli %447, %448 : vector<1x4x128xi32>
    %450 = arith.ori %447, %449 : vector<1x4x128xi32>
    %c50393103_i32_131 = arith.constant 50393103 : i32
    %451 = vector.broadcast %c50393103_i32_131 : i32 to vector<1x4x128xi32>
    %452 = arith.andi %450, %451 : vector<1x4x128xi32>
    %c4_i32_132 = arith.constant 4 : i32
    %453 = vector.broadcast %c4_i32_132 : i32 to vector<1x4x128xi32>
    %454 = arith.shli %452, %453 : vector<1x4x128xi32>
    %455 = arith.ori %452, %454 : vector<1x4x128xi32>
    %c51130563_i32_133 = arith.constant 51130563 : i32
    %456 = vector.broadcast %c51130563_i32_133 : i32 to vector<1x4x128xi32>
    %457 = arith.andi %455, %456 : vector<1x4x128xi32>
    %c2_i32_134 = arith.constant 2 : i32
    %458 = vector.broadcast %c2_i32_134 : i32 to vector<1x4x128xi32>
    %459 = arith.shli %457, %458 : vector<1x4x128xi32>
    %460 = arith.ori %457, %459 : vector<1x4x128xi32>
    %c153391689_i32_135 = arith.constant 153391689 : i32
    %461 = vector.broadcast %c153391689_i32_135 : i32 to vector<1x4x128xi32>
    %462 = arith.andi %460, %461 : vector<1x4x128xi32>
    %c1_i32_136 = arith.constant 1 : i32
    %463 = vector.broadcast %c1_i32_136 : i32 to vector<1x4x128xi32>
    %464 = arith.shli %462, %463 : vector<1x4x128xi32>
    %465 = arith.ori %440, %464 : vector<1x4x128xi32>
    %c1023_i32_137 = arith.constant 1023 : i32
    %466 = vector.broadcast %c1023_i32_137 : i32 to vector<1x4x128xi32>
    %467 = arith.andi %416, %466 : vector<1x4x128xi32>
    %c16_i32_138 = arith.constant 16 : i32
    %468 = vector.broadcast %c16_i32_138 : i32 to vector<1x4x128xi32>
    %469 = arith.shli %467, %468 : vector<1x4x128xi32>
    %470 = arith.ori %467, %469 : vector<1x4x128xi32>
    %c50331903_i32_139 = arith.constant 50331903 : i32
    %471 = vector.broadcast %c50331903_i32_139 : i32 to vector<1x4x128xi32>
    %472 = arith.andi %470, %471 : vector<1x4x128xi32>
    %c8_i32_140 = arith.constant 8 : i32
    %473 = vector.broadcast %c8_i32_140 : i32 to vector<1x4x128xi32>
    %474 = arith.shli %472, %473 : vector<1x4x128xi32>
    %475 = arith.ori %472, %474 : vector<1x4x128xi32>
    %c50393103_i32_141 = arith.constant 50393103 : i32
    %476 = vector.broadcast %c50393103_i32_141 : i32 to vector<1x4x128xi32>
    %477 = arith.andi %475, %476 : vector<1x4x128xi32>
    %c4_i32_142 = arith.constant 4 : i32
    %478 = vector.broadcast %c4_i32_142 : i32 to vector<1x4x128xi32>
    %479 = arith.shli %477, %478 : vector<1x4x128xi32>
    %480 = arith.ori %477, %479 : vector<1x4x128xi32>
    %c51130563_i32_143 = arith.constant 51130563 : i32
    %481 = vector.broadcast %c51130563_i32_143 : i32 to vector<1x4x128xi32>
    %482 = arith.andi %480, %481 : vector<1x4x128xi32>
    %c2_i32_144 = arith.constant 2 : i32
    %483 = vector.broadcast %c2_i32_144 : i32 to vector<1x4x128xi32>
    %484 = arith.shli %482, %483 : vector<1x4x128xi32>
    %485 = arith.ori %482, %484 : vector<1x4x128xi32>
    %c153391689_i32_145 = arith.constant 153391689 : i32
    %486 = vector.broadcast %c153391689_i32_145 : i32 to vector<1x4x128xi32>
    %487 = arith.andi %485, %486 : vector<1x4x128xi32>
    %488 = arith.ori %465, %487 : vector<1x4x128xi32>
    %c0_146 = arith.constant 0 : index
    %c0_147 = arith.constant 0 : index
    %c0_148 = arith.constant 0 : index
    %489 = vector.load %arg2[%c0_146, %c0_147, %c0_148] : memref<1x4x128xi32, #tpu.memory_space<vmem>>, vector<1x4x128xi32>
    tpu.vector_store %arg2[%c0_146, %c0_147, %c0_148], %488 {strides = array<i32>} : memref<1x4x128xi32, #tpu.memory_space<vmem>>, vector<1x4x128xi32>,
    return
  }
  func.func @transform_0(%arg0: i32) -> (i32, i32, i32, i32) {
    %c0_i32 = arith.constant 0 : i32
    %c0_i32_0 = arith.constant 0 : i32
    %c0_i32_1 = arith.constant 0 : i32
    %c0_i32_2 = arith.constant 0 : i32
    return %arg0, %c0_i32, %c0_i32_0, %c0_i32_1 : i32, i32, i32, i32
  }
  func.func @transform_1(%arg0: i32) -> (i32, i32, i32) {
    %c0_i32 = arith.constant 0 : i32
    %c0_i32_0 = arith.constant 0 : i32
    %c0_i32_1 = arith.constant 0 : i32
    return %arg0, %c0_i32, %c0_i32_0 : i32, i32, i32
  }
}

</mosaic_0001>

<bundles_post_ra>
// kernel: _hilbert_codes.1
= control target key start
LH: loop header
LB: loop body
LE: loop exit
PB: predicated region body
PF: predicated region fallthrough
CT: control target
= control target key end

     0   :  { %s565_s6 = smov 0   ;;  %s586_s0 = inlined_call_operand.vmem [shape: f32[2,3,4,128], index: 0, kind: input, shape index: {}]   ;;  %s587_s1 = inlined_call_operand.vmem [shape: s32[2,4,128], index: 1, kind: output, shape index: {}]  }
   0x1 LB: > { %s510_s7 = sadd.s32 4294967295, %s552_s6   ;;  %p514_p0 = scmp.ge.s32.totalorder %s552_s6, 1  ;;  %s552_s6 = sphi %s565_s6, %s11_s6  }
   0x2   : > { %p87_p1 = scmp.lt.s32.totalorder %s552_s6, 3 }
   0x4   : > { %p88_p2 = pnand %p514_p0, %p87_p1 }
   0x5   : > { %p106_p3 = scmp.lt.s32.totalorder (!%p88_p2), %s510_s7, 1 }
   0x6   : > { %91 = sbr.rel (%p88_p2) target bundleno = 421 (0x1a5), region = 24 }
   0xb   : > { %s589_s7 = smov (!%p106_p3, %s510_s7), 1  ;;  %vm122_vm0 = vcmask 1043456  }
   0xc   : > { %s519_s8 = smul.u32 12, %s589_s7  ;;  %s516_s12 = sshll.u32 %s589_s7, 2 }
   0xd   : > { %s114_s15 = scalar_lea.vmem %s587_s1, %s516_s12 }
   0xe   : > { %s110_s11 = scalar_lea.vmem %s586_s0, %s519_s8 }
   0xf   : > { %v115_v0 = vld [vmem:[%s110_s11] sm:$0xf]  ;;  %v116_v1 = vld [vmem:[%s110_s11 + $0x4] sm:$0xf]  ;;  %v117_v2 = vld [vmem:[%s110_s11 + $0x8] sm:$0xf] }
  0x10   : > { %v118_v3 = vmin.f32 %v115_v0, %v116_v1  ;;  %v120_v5 = vmax.f32 %v115_v0, %v116_v1 }
  0x12   : > { %v119_v4 = vmin.f32 %v118_v3, %v117_v2  ;;  %v121_v7 = vmax.f32 %v120_v5, %v117_v2 }
  0x14   : > { %v123_v6 = vsel %vm122_vm0, %v119_v4, inf  ;;  %v133_v8 = vsel %vm122_vm0, %v121_v7, -inf }
  0x15   : > { %124 = vmin.xlane.f32.xlu0 %v123_v6 }
  0x1d   : > { %134 = vmax.xlane.f32.xlu0 %v133_v8 }
  0x88   : > { %v125_v9 = vpop.xlane.xlu0 %124 }
  0x89   : > { %v126_v10 = vsel %vm122_vm0, %v125_v9, inf }
  0x8a   : > { %v127_v11 = vrot.slane %v126_v10, 4 }
  0x8c   : > { %v128_v12 = vmin.f32 %v126_v10, %v127_v11 }
  0x8e   : > { %v129_v14 = vrot.slane %v128_v12, 2 }
  0x90   : > { %v135_v13 = vpop.xlane.xlu0 %134  ;;  %v130_v17 = vmin.f32 %v128_v12, %v129_v14 }
  0x91   : > { %v136_v15 = vsel %vm122_vm0, %v135_v13, -inf }
  0x92   : > { %v137_v16 = vrot.slane %v136_v15, 4  ;;  %v131_v20 = vrot.slane %v130_v17, 1 }
  0x94   : > { %v138_v18 = vmax.f32 %v136_v15, %v137_v16  ;;  %v132_v23 = vmin.f32 %v130_v17, %v131_v20 }
  0x96   : > { %v139_v19 = vrot.slane %v138_v18, 2  ;;  %v160_v38 = vsub.f32 %v115_v0, %v132_v23  ;;  %v165_v39 = vsub.f32 %v116_v1, %v132_v23  ;;  %v170_v40 = vsub.f32 %v117_v2, %v132_v23 }
  0x98   : > { %v140_v21 = vmax.f32 %v138_v18, %v139_v19 }
  0x9a   : > { %v141_v22 = vrot.slane %v140_v21, 1 }
  0x9c   : > { %v142_v24 = vmax.f32 %v140_v21, %v141_v22 }
  0x9e   : > { %v143_v25 = vsub.f32 %v142_v24, %v132_v23 }
  0xa0   : > { %v144_v26 = vmax.f32 %v143_v25, 1e-12 }
  0xa2   : > { %544 = vrcp.f32 %v144_v26  ;;  %v156_v30 = vand.u32 2147483648, %v144_v26  ;;  %v154_v32 = vand.u32 2147483647, %v144_v26  ;;  %vm150_vm2 = vweird.f32 %v144_v26 }
  0xa4   : > { %v157_v34 = vor.u32 1.1754944e-38, %v156_v30  ;;  %vm155_vm4 = vcmp.eq.f32.partialorder %v154_v32, 8.507059e+37 }
  0xa8   : > { %v545_v27 = vpop.eup %544 }
  0xa9   : > { %v146_v28 = vmul.f32 %v545_v27, %v144_v26  ;;  %vm151_vm1 = vweird.f32 %v545_v27 }
  0xaa   : > { %vm152_vm3 = vmor %vm150_vm2, %vm151_vm1 }
  0xab   : > { %v147_v29 = vsub.f32 1.0, %v146_v28 }
  0xad   : > { %v148_v31 = vmul.f32 %v545_v27, %v147_v29 }
  0xaf   : > { %v149_v33 = vadd.f32 %v545_v27, %v148_v31 }
  0xb1   : > { %v153_v35 = vsel %vm152_vm3, %v545_v27, %v149_v33 }
  0xb2   : > { %v158_v36 = vsel %vm155_vm4, %v157_v34, %v153_v35 }
  0xb3   : > { %v159_v37 = vmul.f32 1023.0, %v158_v36 }
  0xb5   : > { %v161_v41 = vmul.f32 %v160_v38, %v159_v37  ;;  %v166_v42 = vmul.f32 %v165_v39, %v159_v37  ;;  %v171_v43 = vmul.f32 %v170_v40, %v159_v37 }
  0xb7   : > { %v162_v44 = vmax.f32 %v161_v41, 0.0  ;;  %v167_v45 = vmax.f32 %v166_v42, 0.0  ;;  %v172_v48 = vmax.f32 %v171_v43, 0.0 }
  0xb9   : > { %v163_v46 = vmin.f32 %v162_v44, 1023.0  ;;  %v168_v47 = vmin.f32 %v167_v45, 1023.0  ;;  %v173_v54 = vmin.f32 %v172_v48, 1023.0 }
  0xbb   : > { %vm520_vm5 = vcmp.lt.s32.totalorder %v163_v46, 0  ;;  %v521_v49 = vceil.f32 %v163_v46  ;;  %v522_v50 = vfloor.f32 %v163_v46  ;;  %vm525_vm6 = vcmp.lt.s32.totalorder %v168_v47, 0 }
  0xbc   : > { %v526_v51 = vceil.f32 %v168_v47  ;;  %v527_v52 = vfloor.f32 %v168_v47  ;;  %v531_v60 = vceil.f32 %v173_v54  ;;  %v532_v61 = vfloor.f32 %v173_v54 }
  0xbd   : > { %v523_v53 = vsel %vm520_vm5, %v521_v49, %v522_v50  ;;  %vm530_vm7 = vcmp.lt.s32.totalorder %v173_v54, 0 }
  0xbe   : > { %v524_v55 = vcvt.f32.s32 %v523_v53  ;;  %v528_v56 = vsel %vm525_vm6, %v526_v51, %v527_v52  ;;  %v533_v0 = vsel %vm530_vm7, %v531_v60, %v532_v61 }
  0xbf   : > { %v529_v59 = vcvt.f32.s32 %v528_v56  ;;  %v534_v3 = vcvt.f32.s32 %v533_v0 }
  0xc0   : > { %v175_v57 = vand.u32 512, %v524_v55  ;;  %v177_v58 = vxor.u32 511, %v524_v55 }
  0xc1   : > { %v179_v1 = vand.u32 512, %v529_v59  ;;  %v188_v8 = vand.u32 512, %v534_v3 }
  0xc2   : > { %vm176_vm8 = vcmp.ne.s32.totalorder %v175_v57, 0 }
  0xc3   : > { %v178_v62 = vsel %vm176_vm8, %v177_v58, %v524_v55  ;;  %vm180_vm9 = vcmp.ne.s32.totalorder %v179_v1, 0  ;;  %vm189_vm10 = vcmp.ne.s32.totalorder %v188_v8, 0 }
  0xc4   : > { %v181_v63 = vxor.u32 %v529_v59, %v178_v62  ;;  %v183_v4 = vxor.u32 511, %v178_v62 }
  0xc6   : > { %v182_v2 = vand.u32 511, %v181_v63 }
  0xc8   : > { %v184_v5 = vxor.u32 %v182_v2, %v178_v62  ;;  %v186_v12 = vxor.u32 %v529_v59, %v182_v2 }
  0xca   : > { %v185_v6 = vsel %vm180_vm9, %v183_v4, %v184_v5  ;;  %v187_v16 = vsel %vm180_vm9, %v529_v59, %v186_v12 }
  0xcb   : > { %v190_v7 = vxor.u32 %v534_v3, %v185_v6  ;;  %v192_v10 = vxor.u32 511, %v185_v6  ;;  %v201_v20 = vand.u32 256, %v187_v16 }
  0xcd   : > { %v191_v9 = vand.u32 511, %v190_v7  ;;  %vm202_vm12 = vcmp.ne.s32.totalorder %v201_v20, 0 }
  0xcf   : > { %v193_v11 = vxor.u32 %v191_v9, %v185_v6  ;;  %v195_v19 = vxor.u32 %v534_v3, %v191_v9 }
  0xd1   : > { %v194_v13 = vsel %vm189_vm10, %v192_v10, %v193_v11  ;;  %v196_v24 = vsel %vm189_vm10, %v534_v3, %v195_v19 }
  0xd2   : > { %v197_v14 = vand.u32 256, %v194_v13  ;;  %v199_v15 = vxor.u32 255, %v194_v13  ;;  %v210_v27 = vand.u32 256, %v196_v24 }
  0xd4   : > { %vm198_vm11 = vcmp.ne.s32.totalorder %v197_v14, 0  ;;  %vm211_vm13 = vcmp.ne.s32.totalorder %v210_v27, 0 }
  0xd5   : > { %v200_v17 = vsel %vm198_vm11, %v199_v15, %v194_v13 }
  0xd6   : > { %v203_v18 = vxor.u32 %v200_v17, %v187_v16  ;;  %v205_v22 = vxor.u32 255, %v200_v17 }
  0xd8   : > { %v204_v21 = vand.u32 255, %v203_v18 }
  0xda   : > { %v206_v23 = vxor.u32 %v204_v21, %v200_v17  ;;  %v208_v31 = vxor.u32 %v204_v21, %v187_v16 }
  0xdc   : > { %v207_v25 = vsel %vm202_vm12, %v205_v22, %v206_v23  ;;  %v209_v35 = vsel %vm202_vm12, %v187_v16, %v208_v31 }
  0xdd   : > { %v212_v26 = vxor.u32 %v207_v25, %v196_v24  ;;  %v214_v29 = vxor.u32 255, %v207_v25  ;;  %v223_v39 = vand.u32 128, %v209_v35 }
  0xdf   : > { %v213_v28 = vand.u32 255, %v212_v26  ;;  %vm224_vm15 = vcmp.ne.s32.totalorder %v223_v39, 0 }
  0xe1   : > { %v215_v30 = vxor.u32 %v213_v28, %v207_v25  ;;  %v217_v38 = vxor.u32 %v213_v28, %v196_v24 }
  0xe3   : > { %v216_v32 = vsel %vm211_vm13, %v214_v29, %v215_v30  ;;  %v218_v43 = vsel %vm211_vm13, %v196_v24, %v217_v38 }
  0xe4   : > { %v219_v33 = vand.u32 128, %v216_v32  ;;  %v221_v34 = vxor.u32 127, %v216_v32  ;;  %v232_v46 = vand.u32 128, %v218_v43 }
  0xe6   : > { %vm220_vm14 = vcmp.ne.s32.totalorder %v219_v33, 0  ;;  %vm233_vm0 = vcmp.ne.s32.totalorder %v232_v46, 0 }
  0xe7   : > { %v222_v36 = vsel %vm220_vm14, %v221_v34, %v216_v32 }
  0xe8   : > { %v225_v37 = vxor.u32 %v222_v36, %v209_v35  ;;  %v227_v41 = vxor.u32 127, %v222_v36 }
  0xea   : > { %v226_v40 = vand.u32 127, %v225_v37 }
  0xec   : > { %v228_v42 = vxor.u32 %v226_v40, %v222_v36  ;;  %v230_v50 = vxor.u32 %v226_v40, %v209_v35 }
  0xee   : > { %v229_v44 = vsel %vm224_vm15, %v227_v41, %v228_v42  ;;  %v231_v54 = vsel %vm224_vm15, %v209_v35, %v230_v50 }
  0xef   : > { %v234_v45 = vxor.u32 %v229_v44, %v218_v43  ;;  %v236_v48 = vxor.u32 127, %v229_v44  ;;  %v245_v58 = vand.u32 64, %v231_v54 }
  0xf1   : > { %v235_v47 = vand.u32 127, %v234_v45  ;;  %vm246_vm2 = vcmp.ne.s32.totalorder %v245_v58, 0 }
  0xf3   : > { %v237_v49 = vxor.u32 %v235_v47, %v229_v44  ;;  %v239_v57 = vxor.u32 %v235_v47, %v218_v43 }
  0xf5   : > { %v238_v51 = vsel %vm233_vm0, %v236_v48, %v237_v49  ;;  %v240_v62 = vsel %vm233_vm0, %v218_v43, %v239_v57 }
  0xf6   : > { %v241_v52 = vand.u32 64, %v238_v51  ;;  %v243_v53 = vxor.u32 63, %v238_v51  ;;  %v254_v1 = vand.u32 64, %v240_v62 }
  0xf8   : > { %vm242_vm1 = vcmp.ne.s32.totalorder %v241_v52, 0  ;;  %vm255_vm3 = vcmp.ne.s32.totalorder %v254_v1, 0 }
  0xf9   : > { %v244_v55 = vsel %vm242_vm1, %v243_v53, %v238_v51 }
  0xfa   : > { %v247_v56 = vxor.u32 %v244_v55, %v231_v54  ;;  %v249_v60 = vxor.u32 63, %v244_v55 }
  0xfc   : > { %v248_v59 = vand.u32 63, %v247_v56 }
  0xfe   : > { %v250_v61 = vxor.u32 %v248_v59, %v244_v55  ;;  %v252_v5 = vxor.u32 %v248_v59, %v231_v54 }
 0x100   : > { %v251_v63 = vsel %vm246_vm2, %v249_v60, %v250_v61  ;;  %v253_v9 = vsel %vm246_vm2, %v231_v54, %v252_v5 }
 0x101   : > { %v256_v0 = vxor.u32 %v251_v63, %v240_v62  ;;  %v258_v3 = vxor.u32 63, %v251_v63  ;;  %v267_v13 = vand.u32 32, %v253_v9 }
 0x103   : > { %v257_v2 = vand.u32 63, %v256_v0  ;;  %vm268_vm5 = vcmp.ne.s32.totalorder %v267_v13, 0 }
 0x105   : > { %v259_v4 = vxor.u32 %v257_v2, %v251_v63  ;;  %v261_v12 = vxor.u32 %v257_v2, %v240_v62 }
 0x107   : > { %v260_v6 = vsel %vm255_vm3, %v258_v3, %v259_v4  ;;  %v262_v17 = vsel %vm255_vm3, %v240_v62, %v261_v12 }
 0x108   : > { %v263_v7 = vand.u32 32, %v260_v6  ;;  %v265_v8 = vxor.u32 31, %v260_v6  ;;  %v276_v20 = vand.u32 32, %v262_v17 }
 0x10a   : > { %vm264_vm4 = vcmp.ne.s32.totalorder %v263_v7, 0  ;;  %vm277_vm6 = vcmp.ne.s32.totalorder %v276_v20, 0 }
 0x10b   : > { %v266_v10 = vsel %vm264_vm4, %v265_v8, %v260_v6 }
 0x10c   : > { %v269_v11 = vxor.u32 %v266_v10, %v253_v9  ;;  %v271_v15 = vxor.u32 31, %v266_v10 }
 0x10e   : > { %v270_v14 = vand.u32 31, %v269_v11 }
 0x110   : > { %v272_v16 = vxor.u32 %v270_v14, %v266_v10  ;;  %v274_v24 = vxor.u32 %v270_v14, %v253_v9 }
 0x112   : > { %v273_v18 = vsel %vm268_vm5, %v271_v15, %v272_v16  ;;  %v275_v28 = vsel %vm268_vm5, %v253_v9, %v274_v24 }
 0x113   : > { %v278_v19 = vxor.u32 %v273_v18, %v262_v17  ;;  %v280_v22 = vxor.u32 31, %v273_v18  ;;  %v289_v32 = vand.u32 16, %v275_v28 }
 0x115   : > { %v279_v21 = vand.u32 31, %v278_v19  ;;  %vm290_vm8 = vcmp.ne.s32.totalorder %v289_v32, 0 }
 0x117   : > { %v281_v23 = vxor.u32 %v279_v21, %v273_v18  ;;  %v283_v31 = vxor.u32 %v279_v21, %v262_v17 }
 0x119   : > { %v282_v25 = vsel %vm277_vm6, %v280_v22, %v281_v23  ;;  %v284_v36 = vsel %vm277_vm6, %v262_v17, %v283_v31 }
 0x11a   : > { %v285_v26 = vand.u32 16, %v282_v25  ;;  %v287_v27 = vxor.u32 15, %v282_v25  ;;  %v298_v39 = vand.u32 16, %v284_v36 }
 0x11c   : > { %vm286_vm7 = vcmp.ne.s32.totalorder %v285_v26, 0  ;;  %vm299_vm9 = vcmp.ne.s32.totalorder %v298_v39, 0 }
 0x11d   : > { %v288_v29 = vsel %vm286_vm7, %v287_v27, %v282_v25 }
 0x11e   : > { %v291_v30 = vxor.u32 %v288_v29, %v275_v28  ;;  %v293_v34 = vxor.u32 15, %v288_v29 }
 0x120   : > { %v292_v33 = vand.u32 15, %v291_v30 }
 0x122   : > { %v294_v35 = vxor.u32 %v292_v33, %v288_v29  ;;  %v296_v43 = vxor.u32 %v292_v33, %v275_v28 }
 0x124   : > { %v295_v37 = vsel %vm290_vm8, %v293_v34, %v294_v35  ;;  %v297_v47 = vsel %vm290_vm8, %v275_v28, %v296_v43 }
 0x125   : > { %v300_v38 = vxor.u32 %v295_v37, %v284_v36  ;;  %v302_v41 = vxor.u32 15, %v295_v37  ;;  %v311_v51 = vand.u32 8, %v297_v47 }
 0x127   : > { %v301_v40 = vand.u32 15, %v300_v38  ;;  %vm312_vm11 = vcmp.ne.s32.totalorder %v311_v51, 0 }
 0x129   : > { %v303_v42 = vxor.u32 %v301_v40, %v295_v37  ;;  %v305_v50 = vxor.u32 %v301_v40, %v284_v36 }
 0x12b   : > { %v304_v44 = vsel %vm299_vm9, %v302_v41, %v303_v42  ;;  %v306_v55 = vsel %vm299_vm9, %v284_v36, %v305_v50 }
 0x12c   : > { %v307_v45 = vand.u32 8, %v304_v44  ;;  %v309_v46 = vxor.u32 7, %v304_v44  ;;  %v320_v58 = vand.u32 8, %v306_v55 }
 0x12e   : > { %vm308_vm10 = vcmp.ne.s32.totalorder %v307_v45, 0  ;;  %vm321_vm12 = vcmp.ne.s32.totalorder %v320_v58, 0  ;;  %v554_v45 = vmov 0  }
 0x12f   : > { %v310_v48 = vsel %vm308_vm10, %v309_v46, %v304_v44 }
 0x130   : > { %v313_v49 = vxor.u32 %v310_v48, %v297_v47  ;;  %v315_v53 = vxor.u32 7, %v310_v48 }
 0x132   : > { %v314_v52 = vand.u32 7, %v313_v49 }
 0x134   : > { %v316_v54 = vxor.u32 %v314_v52, %v310_v48  ;;  %v318_v62 = vxor.u32 %v314_v52, %v297_v47 }
 0x136   : > { %v317_v56 = vsel %vm312_vm11, %v315_v53, %v316_v54  ;;  %v319_v2 = vsel %vm312_vm11, %v297_v47, %v318_v62 }
 0x137   : > { %v322_v57 = vxor.u32 %v317_v56, %v306_v55  ;;  %v324_v60 = vxor.u32 7, %v317_v56  ;;  %v333_v6 = vand.u32 4, %v319_v2 }
 0x139   : > { %v323_v59 = vand.u32 7, %v322_v57  ;;  %vm334_vm14 = vcmp.ne.s32.totalorder %v333_v6, 0 }
 0x13b   : > { %v325_v61 = vxor.u32 %v323_v59, %v317_v56  ;;  %v327_v5 = vxor.u32 %v323_v59, %v306_v55 }
 0x13d   : > { %v326_v63 = vsel %vm321_vm12, %v324_v60, %v325_v61  ;;  %v328_v10 = vsel %vm321_vm12, %v306_v55, %v327_v5 }
 0x13e   : > { %v329_v0 = vand.u32 4, %v326_v63  ;;  %v331_v1 = vxor.u32 3, %v326_v63  ;;  %v342_v13 = vand.u32 4, %v328_v10 }
 0x140   : > { %vm330_vm13 = vcmp.ne.s32.totalorder %v329_v0, 0  ;;  %vm343_vm15 = vcmp.ne.s32.totalorder %v342_v13, 0 }
 0x141   : > { %v332_v3 = vsel %vm330_vm13, %v331_v1, %v326_v63 }
 0x142   : > { %v335_v4 = vxor.u32 %v332_v3, %v319_v2  ;;  %v337_v8 = vxor.u32 3, %v332_v3 }
 0x144   : > { %v336_v7 = vand.u32 3, %v335_v4 }
 0x146   : > { %v338_v9 = vxor.u32 %v336_v7, %v332_v3  ;;  %v340_v17 = vxor.u32 %v336_v7, %v319_v2 }
 0x148   : > { %v339_v11 = vsel %vm334_vm14, %v337_v8, %v338_v9  ;;  %v341_v21 = vsel %vm334_vm14, %v319_v2, %v340_v17 }
 0x149   : > { %v344_v12 = vxor.u32 %v339_v11, %v328_v10  ;;  %v346_v15 = vxor.u32 3, %v339_v11  ;;  %v355_v25 = vand.u32 2, %v341_v21 }
 0x14b   : > { %v345_v14 = vand.u32 3, %v344_v12  ;;  %vm356_vm1 = vcmp.ne.s32.totalorder %v355_v25, 0 }
 0x14d   : > { %v347_v16 = vxor.u32 %v345_v14, %v339_v11  ;;  %v349_v24 = vxor.u32 %v345_v14, %v328_v10 }
 0x14f   : > { %v348_v18 = vsel %vm343_vm15, %v346_v15, %v347_v16  ;;  %v350_v29 = vsel %vm343_vm15, %v328_v10, %v349_v24 }
 0x150   : > { %v351_v19 = vand.u32 2, %v348_v18  ;;  %v353_v20 = vxor.u32 1, %v348_v18  ;;  %v364_v32 = vand.u32 2, %v350_v29 }
 0x152   : > { %vm352_vm0 = vcmp.ne.s32.totalorder %v351_v19, 0  ;;  %vm365_vm2 = vcmp.ne.s32.totalorder %v364_v32, 0 }
 0x153   : > { %v354_v22 = vsel %vm352_vm0, %v353_v20, %v348_v18 }
 0x154   : > { %v357_v23 = vxor.u32 %v354_v22, %v341_v21  ;;  %v359_v27 = vxor.u32 1, %v354_v22 }
 0x156   : > { %v358_v26 = vand.u32 1, %v357_v23 }
 0x158   : > { %v360_v28 = vxor.u32 %v358_v26, %v354_v22  ;;  %v362_v33 = vxor.u32 %v358_v26, %v341_v21 }
 0x15a   : > { %v361_v30 = vsel %vm356_vm1, %v359_v27, %v360_v28  ;;  %v363_v38 = vsel %vm356_vm1, %v341_v21, %v362_v33 }
 0x15b   : > { %v366_v31 = vxor.u32 %v361_v30, %v350_v29  ;;  %v368_v35 = vxor.u32 1, %v361_v30 }
 0x15d   : > { %v367_v34 = vand.u32 1, %v366_v31 }
 0x15f   : > { %v369_v36 = vxor.u32 %v367_v34, %v361_v30  ;;  %v371_v37 = vxor.u32 %v367_v34, %v350_v29 }
 0x161   : > { %v370_v39 = vsel %vm365_vm2, %v368_v35, %v369_v36  ;;  %v372_v41 = vsel %vm365_vm2, %v350_v29, %v371_v37 }
 0x162   : > { %v373_v40 = vxor.u32 %v370_v39, %v363_v38 }
 0x164   : > { %v374_v42 = vxor.u32 %v373_v40, %v372_v41 }
 0x166   : > { %v375_v43 = vand.u32 512, %v374_v42  ;;  %v378_v44 = vand.u32 256, %v374_v42  ;;  %v382_v48 = vand.u32 128, %v374_v42  ;;  %v386_v51 = vand.u32 64, %v374_v42 }
 0x167   : > { %v390_v54 = vand.u32 32, %v374_v42  ;;  %v394_v57 = vand.u32 16, %v374_v42  ;;  %v398_v60 = vand.u32 8, %v374_v42  ;;  %v402_v63 = vand.u32 4, %v374_v42 }
 0x168   : > { %vm376_vm3 = vcmp.ne.s32.totalorder %v375_v43, 0  ;;  %vm379_vm4 = vcmp.ne.s32.totalorder %v378_v44, 0  ;;  %vm383_vm5 = vcmp.ne.s32.totalorder %v382_v48, 0  ;;  %vm387_vm6 = vcmp.ne.s32.totalorder %v386_v51, 0 }
 0x169   : > { %v377_v46 = vsel %vm376_vm3, 511, %v554_v45  ;;  %vm391_vm7 = vcmp.ne.s32.totalorder %v390_v54, 0  ;;  %vm395_vm8 = vcmp.ne.s32.totalorder %v394_v57, 0  ;;  %vm399_vm9 = vcmp.ne.s32.totalorder %v398_v60, 0 }
 0x16a   : > { %v380_v47 = vxor.u32 255, %v377_v46  ;;  %v406_v2 = vand.u32 2, %v374_v42  ;;  %vm403_vm10 = vcmp.ne.s32.totalorder %v402_v63, 0 }
 0x16c   : > { %v381_v49 = vsel %vm379_vm4, %v380_v47, %v377_v46  ;;  %vm407_vm11 = vcmp.ne.s32.totalorder %v406_v2, 0 }
 0x16d   : > { %v384_v50 = vxor.u32 127, %v381_v49 }
 0x16f   : > { %v385_v52 = vsel %vm383_vm5, %v384_v50, %v381_v49 }
 0x170   : > { %v388_v53 = vxor.u32 63, %v385_v52 }
 0x172   : > { %v389_v55 = vsel %vm387_vm6, %v388_v53, %v385_v52 }
 0x173   : > { %v392_v56 = vxor.u32 31, %v389_v55 }
 0x175   : > { %v393_v58 = vsel %vm391_vm7, %v392_v56, %v389_v55 }
 0x176   : > { %v396_v59 = vxor.u32 15, %v393_v58 }
 0x178   : > { %v397_v61 = vsel %vm395_vm8, %v396_v59, %v393_v58 }
 0x179   : > { %v400_v62 = vxor.u32 7, %v397_v61 }
 0x17b   : > { %v401_v0 = vsel %vm399_vm9, %v400_v62, %v397_v61 }
 0x17c   : > { %v404_v1 = vxor.u32 3, %v401_v0 }
 0x17e   : > { %v405_v3 = vsel %vm403_vm10, %v404_v1, %v401_v0 }
 0x17f   : > { %v408_v4 = vxor.u32 1, %v405_v3 }
 0x181   : > { %v409_v5 = vsel %vm407_vm11, %v408_v4, %v405_v3 }
 0x182   : > { %v410_v6 = vxor.u32 %v409_v5, %v370_v39  ;;  %v411_v7 = vxor.u32 %v409_v5, %v373_v40  ;;  %v412_v8 = vxor.u32 %v409_v5, %v374_v42 }
 0x184   : > { %v413_v9 = vand.u32 1023, %v410_v6  ;;  %v427_v10 = vand.u32 1023, %v411_v7  ;;  %v442_v11 = vand.u32 1023, %v412_v8 }
 0x186   : > { %v414_v12 = vshll.u32 %v413_v9, 16  ;;  %v428_v13 = vshll.u32 %v427_v10, 16  ;;  %v443_v14 = vshll.u32 %v442_v11, 16 }
 0x188   : > { %v415_v15 = vor.u32 %v414_v12, %v413_v9  ;;  %v429_v16 = vor.u32 %v428_v13, %v427_v10  ;;  %v444_v17 = vor.u32 %v443_v14, %v442_v11 }
 0x18a   : > { %v416_v18 = vand.u32 50331903, %v415_v15  ;;  %v430_v19 = vand.u32 50331903, %v429_v16  ;;  %v445_v20 = vand.u32 50331903, %v444_v17 }
 0x18c   : > { %v417_v21 = vshll.u32 %v416_v18, 8  ;;  %v431_v22 = vshll.u32 %v430_v19, 8  ;;  %v446_v23 = vshll.u32 %v445_v20, 8 }
 0x18e   : > { %v418_v24 = vor.u32 %v417_v21, %v416_v18  ;;  %v432_v25 = vor.u32 %v431_v22, %v430_v19  ;;  %v447_v26 = vor.u32 %v446_v23, %v445_v20 }
 0x190   : > { %v419_v27 = vand.u32 50393103, %v418_v24  ;;  %v433_v28 = vand.u32 50393103, %v432_v25  ;;  %v448_v29 = vand.u32 50393103, %v447_v26 }
 0x192   : > { %v420_v30 = vshll.u32 %v419_v27, 4  ;;  %v434_v31 = vshll.u32 %v433_v28, 4  ;;  %v449_v32 = vshll.u32 %v448_v29, 4 }
 0x194   : > { %v421_v33 = vor.u32 %v420_v30, %v419_v27  ;;  %v435_v34 = vor.u32 %v434_v31, %v433_v28  ;;  %v450_v35 = vor.u32 %v449_v32, %v448_v29 }
 0x196   : > { %v422_v36 = vand.u32 51130563, %v421_v33  ;;  %v436_v37 = vand.u32 51130563, %v435_v34  ;;  %v451_v38 = vand.u32 51130563, %v450_v35 }
 0x198   : > { %v423_v39 = vshll.u32 %v422_v36, 2  ;;  %v437_v40 = vshll.u32 %v436_v37, 2  ;;  %v452_v41 = vshll.u32 %v451_v38, 2 }
 0x19a   : > { %v424_v42 = vor.u32 %v423_v39, %v422_v36  ;;  %v438_v43 = vor.u32 %v437_v40, %v436_v37  ;;  %v453_v46 = vor.u32 %v452_v41, %v451_v38 }
 0x19c   : > { %v425_v44 = vand.u32 153391689, %v424_v42  ;;  %v439_v45 = vand.u32 153391689, %v438_v43  ;;  %v454_v50 = vand.u32 153391689, %v453_v46 }
 0x19e   : > { %v426_v47 = vshll.u32 %v425_v44, 2  ;;  %v440_v48 = vshll.u32 %v439_v45, 1 }
 0x1a0   : > { %v441_v49 = vor.u32 %v440_v48, %v426_v47 }
 0x1a2   : > { %v455_v51 = vor.u32 %v454_v50, %v441_v49 }
 0x1a4   : > { %456 = vst [vmem:[%s114_s15] sm:$0xf] %v455_v51 }
 0x1a5 PF: > { %s11_s6 = sadd.s32 1, %s552_s6  }
 0x1a6   : > { %p8_p4 = scmp.ge.s32.totalorder %s11_s6, 4  }
 0x1a8   :  { %10 = sbr.rel (!%p8_p4) target bundleno = 1 (0x1), region = 54 }

</bundles_post_ra>
